<compile_context>
chip_gen: v6e
topology: v6e:2x2x1
jax: 0.10.0
libtpu: 0.0.40
codegen_flags: <defaults>
</compile_context>

<pallas_src>
import jax
import jax.numpy as jnp
from jax.experimental import pallas as pl
from jax.experimental.pallas import tpu as pltpu


_LANE = 128
_SUBLANE = 8
_WIDE_C = 2048                         # lane-dense slab width (multiple of 128)
_TARGET_TILE_BYTES = 4 * 1024 * 1024   # ~4 MiB per buffer -> 16 MiB with
                                       # double-buffered in+out; safe on v7x.


def _copy_kernel(x_ref, o_ref):
    # Pure data movement: load the VMEM tile, store it back. No VPU work.
    o_ref[...] = x_ref[...]


def _resolve_shape(total, shape):
    """Resolve a torch.view-style shape (may contain a single -1)."""
    shape = tuple(int(s) for s in shape)
    if -1 in shape:
        idx = shape.index(-1)
        known = 1
        for i, s in enumerate(shape):
            if i != idx:
                known *= s
        assert known > 0 and total % known == 0, "view shape incompatible"
        shape = shape[:idx] + (total // known,) + shape[idx + 1:]
    prod = 1
    for s in shape:
        prod *= s
    assert prod == total, "view shape incompatible with input size"
    return shape


def _layout(total, itemsize):
    """Pick (C, TR, rows_padded, grid) for a lane-dense tiled identity copy."""
    c = _WIDE_C
    rows = -(-total // c)  # cdiv
    # Rows per tile: target ~4 MiB per buffer, rounded down to a multiple of 8.
    tr = max(_SUBLANE,
             (_TARGET_TILE_BYTES // (c * itemsize)) // _SUBLANE * _SUBLANE)
    if rows <= tr:
        # Small input: single tile; pad rows up to a multiple of 8 sublanes.
        rows_p = -(-rows // _SUBLANE) * _SUBLANE
        tr = rows_p
        grid = 1
    else:
        # Pad rows so the tile divides evenly -> no partial blocks.
        rows_p = -(-rows // tr) * tr
        grid = rows_p // tr
    return c, tr, rows_p, grid


def _pallas_copy(flat):
    """Identity copy of a 1D array through a tiled, lane-dense Pallas kernel."""
    total = flat.shape[0]
    itemsize = jnp.dtype(flat.dtype).itemsize
    c, tr, rows_p, grid = _layout(total, itemsize)
    padded = rows_p * c

    if padded != total:
        flat = jnp.pad(flat, (0, padded - total))
    x2 = jnp.reshape(flat, (rows_p, c))

    out2 = pl.pallas_call(
        _copy_kernel,
        out_shape=jax.ShapeDtypeStruct((rows_p, c), x2.dtype),
        grid=(grid,),
        in_specs=[pl.BlockSpec((tr, c), lambda i: (i, 0))],
        out_specs=pl.BlockSpec((tr, c), lambda i: (i, 0)),
        compiler_params=pltpu.CompilerParams(
            dimension_semantics=("parallel",)),
        cost_estimate=pl.CostEstimate(
            flops=0,
            transcendentals=0,
            bytes_accessed=2 * padded * itemsize),
    )(x2)

    out_flat = jnp.reshape(out2, (padded,))
    if padded != total:
        out_flat = out_flat[:total]
    return out_flat


class View:
    """JAX/Pallas equivalent of the torch `View` module."""

    def __init__(self, *args, use_pallas=True):
        self.shape = args
        # A view is metadata-only; set use_pallas=False to skip the copy and
        # make the op truly free (jnp.reshape).
        self.use_pallas = use_pallas

    def __call__(self, x):
        total = x.size
        target = _resolve_shape(total, self.shape)
        if not self.use_pallas:
            return jnp.reshape(x, target)
        flat = jnp.reshape(x, (-1,))       # row-major flatten (torch .view)
        out_flat = _pallas_copy(flat)
        return jnp.reshape(out_flat, target)


if __name__ == "__main__":
    key = jax.random.PRNGKey(0)
    k1, k2 = jax.random.split(key)

    # Small NCHW-like input consistent with View(B, -1) between conv and linear.
    x = jax.random.normal(k1, (2, 4, 16, 16), dtype=jnp.float32)
    view = View(2, -1)                     # -> (2, 1024)
    y = jax.block_until_ready(view(x))
    ref = jnp.reshape(x, (2, -1))
    assert y.shape == (2, 1024), y.shape
    assert y.dtype == x.dtype
    assert bool(jnp.all(y == ref))

    # Second check exercising the multi-tile grid path (rows > tile rows).
    x2 = jax.random.normal(k2, (1, 16, 256, 320), dtype=jnp.float32)  # 5 MiB
    view2 = View(1, -1)
    y2 = jax.block_until_ready(view2(x2))
    ref2 = jnp.reshape(x2, (1, -1))
    assert y2.shape == ref2.shape
    assert bool(jnp.all(y2 == ref2))

    print("KERNEL_OK")
</pallas_src>

<mosaic_0001>
module attributes {stable_mosaic.version = 11 : i64} {
  func.func @_copy_kernel(%arg0: i32, %arg1: memref<8x2048xf32, #tpu.memory_space<vmem>>, %arg2: memref<8x2048xf32, #tpu.memory_space<vmem>>) attributes {dimension_semantics = [#tpu.dimension_semantics<parallel>], iteration_bounds = array<i64: 1>, scalar_prefetch = 0 : i64, scratch_operands = 0 : i64, tpu.core_type = #tpu.core_type<tc>, window_params = [{transform_indices = @transform_0, window_bounds = array<i64: 8, 2048>}, {transform_indices = @transform_1, window_bounds = array<i64: 8, 2048>}]} {
    %c0 = arith.constant 0 : index
    %c0_0 = arith.constant 0 : index
    %0 = vector.load %arg1[%c0, %c0_0] : memref<8x2048xf32, #tpu.memory_space<vmem>>, vector<8x2048xf32>
    %c0_1 = arith.constant 0 : index
    %c0_2 = arith.constant 0 : index
    %1 = vector.load %arg2[%c0_1, %c0_2] : memref<8x2048xf32, #tpu.memory_space<vmem>>, vector<8x2048xf32>
    tpu.vector_store %arg2[%c0_1, %c0_2], %0 {strides = array<i32>} : memref<8x2048xf32, #tpu.memory_space<vmem>>, vector<8x2048xf32>,
    return
  }
  func.func @transform_0(%arg0: i32) -> (i32, i32) {
    %c0_i32 = arith.constant 0 : i32
    %c0_i32_0 = arith.constant 0 : i32
    return %arg0, %c0_i32 : i32, i32
  }
  func.func @transform_1(%arg0: i32) -> (i32, i32) {
    %c0_i32 = arith.constant 0 : i32
    %c0_i32_0 = arith.constant 0 : i32
    return %arg0, %c0_i32 : i32, i32
  }
}

</mosaic_0001>

<bundles_post_ra>
// kernel: tpu_custom_call.1
= control target key start
LH: loop header
LB: loop body
LE: loop exit
PB: predicated region body
PF: predicated region fallthrough
CT: control target
= control target key end

     0   :  { %6 = vsyncpa [#allocation3], 0  ;;  %s132_s0 = inlined_call_operand.hbm [shape: f32[8,2048], index: 0, kind: input, shape index: {}]   ;;  %s133_s1 = inlined_call_operand.hbm [shape: f32[8,2048], index: 1, kind: output, shape index: {}]  }
   0x1   :  { %7 = vsyncpa [#allocation4], 0  ;;  %s114_s6 = smov [#allocation2]  }
   0x2   :  { %s14_s7 = sshll.u32 %s114_s6, 4  ;;  %s15_s7 = int_to_ptr.vmem [resolvable:$true] %s14_s7 }
   0x3   :  { %s78_s8 = scalar_lea.vmem %s15_s7, 2048  ;;  %p83_p1 = scmp.lt.s32.totalorder %s15_s7, %s15_s7 }
   0x4   :  { %p79_p0 = scmp.ne.s32.totalorder %s15_s7, %s78_s8  ;;  %p84_p2 = scmp.lt.s32.totalorder %s78_s8, %s78_s8 }
   0x6   :  { %p85_p3 = por %p84_p2, %p83_p1 }
   0x8   :  { %p86_p4 = pnand %p85_p3, %p79_p0 }
   0xa   :  { %89 = shalt.err (!%p86_p4)
}
   0xb   :  { %17 = dma.hbm_to_vmem [thread:$0]  %s132_s0, 2048, %s15_s7, [#allocation3]  }
   0xc   :  { %110 = dma.done.wait [#allocation3], 2048  }
   0xd   :  { %111 = vsyncadd [#allocation3], 4294965248  ;;  %v21_v0 = vld [vmem:[#allocation2] sm:$0xff]  ;;  %v22_v1 = vld [vmem:[#allocation2 + $0x8] sm:$0xff]  ;;  %s115_s11 = smov [#allocation5]  }
   0xe   :  { %v23_v2 = vld [vmem:[#allocation2 + $0x10] sm:$0xff]  ;;  %37 = vst [vmem:[#allocation5] sm:$0xff] %v21_v0  ;;  %38 = vst [vmem:[#allocation5 + $0x8] sm:$0xff] %v22_v1  ;;  %v24_v3 = vld [vmem:[#allocation2 + $0x18] sm:$0xff]  ;;  %s59_s12 = sshll.u32 %s115_s11, 4  ;;  %s60_s12 = int_to_ptr.vmem [resolvable:$true] %s59_s12 }
   0xf   :  { %39 = vst [vmem:[#allocation5 + $0x10] sm:$0xff] %v23_v2  ;;  %v25_v4 = vld [vmem:[#allocation2 + $0x20] sm:$0xff]  ;;  %v26_v5 = vld [vmem:[#allocation2 + $0x28] sm:$0xff]  ;;  %40 = vst [vmem:[#allocation5 + $0x18] sm:$0xff] %v24_v3  ;;  %s90_s0 = scalar_lea.vmem %s60_s12, 2048  ;;  %p95_p6 = scmp.lt.s32.totalorder %s60_s12, %s60_s12 }
  0x10   :  { %41 = vst [vmem:[#allocation5 + $0x20] sm:$0xff] %v25_v4  ;;  %42 = vst [vmem:[#allocation5 + $0x28] sm:$0xff] %v26_v5  ;;  %v27_v6 = vld [vmem:[#allocation2 + $0x30] sm:$0xff]  ;;  %v28_v7 = vld [vmem:[#allocation2 + $0x38] sm:$0xff]  ;;  %p91_p5 = scmp.ne.s32.totalorder %s60_s12, %s90_s0  ;;  %p96_p7 = scmp.lt.s32.totalorder %s90_s0, %s90_s0 }
  0x11   :  { %v29_v8 = vld [vmem:[#allocation2 + $0x40] sm:$0xff]  ;;  %43 = vst [vmem:[#allocation5 + $0x30] sm:$0xff] %v27_v6  ;;  %44 = vst [vmem:[#allocation5 + $0x38] sm:$0xff] %v28_v7  ;;  %v30_v9 = vld [vmem:[#allocation2 + $0x48] sm:$0xff] }
  0x12   :  { %45 = vst [vmem:[#allocation5 + $0x40] sm:$0xff] %v29_v8  ;;  %v31_v10 = vld [vmem:[#allocation2 + $0x50] sm:$0xff]  ;;  %v32_v11 = vld [vmem:[#allocation2 + $0x58] sm:$0xff]  ;;  %46 = vst [vmem:[#allocation5 + $0x48] sm:$0xff] %v30_v9  ;;  %p97_p8 = por %p96_p7, %p95_p6 }
  0x13   :  { %47 = vst [vmem:[#allocation5 + $0x50] sm:$0xff] %v31_v10  ;;  %48 = vst [vmem:[#allocation5 + $0x58] sm:$0xff] %v32_v11  ;;  %v33_v12 = vld [vmem:[#allocation2 + $0x60] sm:$0xff]  ;;  %v34_v13 = vld [vmem:[#allocation2 + $0x68] sm:$0xff] }
  0x14   :  { %v35_v14 = vld [vmem:[#allocation2 + $0x70] sm:$0xff]  ;;  %49 = vst [vmem:[#allocation5 + $0x60] sm:$0xff] %v33_v12  ;;  %50 = vst [vmem:[#allocation5 + $0x68] sm:$0xff] %v34_v13  ;;  %v36_v15 = vld [vmem:[#allocation2 + $0x78] sm:$0xff]  ;;  %p98_p9 = pnand %p97_p8, %p91_p5 }
  0x15   :  { %51 = vst [vmem:[#allocation5 + $0x70] sm:$0xff] %v35_v14  ;;  %52 = vst [vmem:[#allocation5 + $0x78] sm:$0xff] %v36_v15 }
  0x16   :  { %101 = shalt.err (!%p98_p9)
}
  0x17   :  { %62 = dma.vmem_to_hbm [thread:$0]  %s60_s12, 2048, %s133_s1, [#allocation4]  }
  0x18   :  { %112 = dma.done.wait [#allocation4], 2048  }
  0x19   :  { %113 = vsyncadd [#allocation4], 4294965248 }
  0x1a   :  { %66 = vsyncpa [#allocation3], 1 }
  0x1b   :  { %67 = vsyncpa [#allocation4], 1 }

</bundles_post_ra>
